<compile_context>
chip_gen: v7x
topology: tpu7x:2x2x1
jax: 0.10.0
libtpu: 0.0.40
codegen_flags: <defaults>
</compile_context>

<pallas_src>
import functools

import jax
import jax.numpy as jnp
from jax.experimental import pallas as pl
from jax.experimental.pallas import tpu as pltpu


def _lambda_kernel(x_ref, o_ref, *, lambd):
    # Apply the elementwise, JAX-traceable lambda to the whole VMEM tile.
    o_ref[...] = lambd(x_ref[...]).astype(o_ref.dtype)


def lambda_layer_forward(x, lambd, *, target_block_bytes=2 << 20):
    """LambdaLayer.forward: returns lambd(x).

    Elementwise lambdas run inside a Pallas TPU kernel over ~2 MiB lane-dense
    tiles; non-elementwise lambdas / misaligned sizes fall back to plain XLA.
    """
    out_struct = jax.eval_shape(lambd, jax.ShapeDtypeStruct(x.shape, x.dtype))

    n = x.size
    lanes = next((l for l in (1024, 512, 256, 128) if n % l == 0), None)

    # Fallback paths: non-elementwise lambda, empty input, or a size that is
    # not a multiple of 128 (avoids the old pad/concat + post-slice copies).
    # TODO(synk): ci_resnet's option-A shortcut lambda (x[:, :, ::2, ::2] plus
    # channel zero-pad) is not elementwise; it takes this XLA fallback path.
    if out_struct.shape != x.shape or n == 0 or lanes is None:
        return lambd(x)

    out_dtype = out_struct.dtype
    rows = n // lanes

    # Block sizing: ~target_block_bytes per buffer. block_rows is either a
    # multiple of 8 or the full row extent (the (8,128) layout rule).
    itemsize = max(x.dtype.itemsize, out_struct.dtype.itemsize)
    max_rows = max(8, (target_block_bytes // (lanes * itemsize)) // 8 * 8)
    block_rows = rows if rows <= max_rows else max_rows
    grid = (pl.cdiv(rows, block_rows),)

    x2d = x.reshape(rows, lanes)  # free reshape: no pad, no extra HBM copy

    out2d = pl.pallas_call(
        functools.partial(_lambda_kernel, lambd=lambd),
        out_shape=jax.ShapeDtypeStruct((rows, lanes), out_dtype),
        grid_spec=pltpu.PrefetchScalarGridSpec(
            num_scalar_prefetch=0,
            grid=grid,
            in_specs=[pl.BlockSpec((block_rows, lanes), lambda i: (i, 0))],
            out_specs=pl.BlockSpec((block_rows, lanes), lambda i: (i, 0)),
        ),
        compiler_params=pltpu.CompilerParams(
            dimension_semantics=("parallel",)),
    )(x2d)

    return out2d.reshape(out_struct.shape)


if __name__ == "__main__":
    key = jax.random.PRNGKey(0)
    # NCHW input, like ci_resnet feature maps.
    x = jax.random.normal(key, (2, 4, 16, 16), dtype=jnp.float32)

    # Representative elementwise lambdas (close over plain Python scalars so
    # dtype promotion matches PyTorch exactly).
    affine = lambda t: 1.5 * t - 0.25
    act = lambda t: jnp.maximum(t, 0.0) + jnp.tanh(t)

    out_affine = jax.block_until_ready(lambda_layer_forward(x, affine))
    out_act = jax.block_until_ready(lambda_layer_forward(x, act))

    ref_affine = affine(x)
    ref_act = act(x)

    assert out_affine.shape == x.shape and out_affine.dtype == ref_affine.dtype
    assert out_act.shape == x.shape and out_act.dtype == ref_act.dtype
    assert jnp.allclose(out_affine, ref_affine, atol=1e-6), "affine mismatch"
    assert jnp.allclose(out_act, ref_act, atol=1e-6), "activation mismatch"

    print("KERNEL_OK")
</pallas_src>

<mosaic_0001>
module attributes {stable_mosaic.version = 11 : i64} {
  func.func @_lambda_kernel(%arg0: i32, %arg1: memref<2x1024xf32, #tpu.memory_space<vmem>>, %arg2: memref<2x1024xf32, #tpu.memory_space<vmem>>) attributes {dimension_semantics = [#tpu.dimension_semantics<parallel>], iteration_bounds = array<i64: 1>, scalar_prefetch = 0 : i64, scratch_operands = 0 : i64, tpu.core_type = #tpu.core_type<tc>, window_params = [{transform_indices = @transform_0, window_bounds = array<i64: 2, 1024>}, {transform_indices = @transform_1, window_bounds = array<i64: 2, 1024>}]} {
    %c0 = arith.constant 0 : index
    %c0_0 = arith.constant 0 : index
    %0 = vector.load %arg1[%c0, %c0_0] : memref<2x1024xf32, #tpu.memory_space<vmem>>, vector<2x1024xf32>
    %cst = arith.constant 1.500000e+00 : f32
    %1 = vector.broadcast %cst : f32 to vector<2x1024xf32>
    %2 = arith.mulf %1, %0 : vector<2x1024xf32>
    %cst_1 = arith.constant 2.500000e-01 : f32
    %3 = vector.broadcast %cst_1 : f32 to vector<2x1024xf32>
    %4 = arith.subf %2, %3 : vector<2x1024xf32>
    %c0_2 = arith.constant 0 : index
    %c0_3 = arith.constant 0 : index
    %5 = vector.load %arg2[%c0_2, %c0_3] : memref<2x1024xf32, #tpu.memory_space<vmem>>, vector<2x1024xf32>
    tpu.vector_store %arg2[%c0_2, %c0_3], %4 {strides = array<i32>} : memref<2x1024xf32, #tpu.memory_space<vmem>>, vector<2x1024xf32>,
    return
  }
  func.func @transform_0(%arg0: i32) -> (i32, i32) {
    %c0_i32 = arith.constant 0 : i32
    %c0_i32_0 = arith.constant 0 : i32
    return %arg0, %c0_i32 : i32, i32
  }
  func.func @transform_1(%arg0: i32) -> (i32, i32) {
    %c0_i32 = arith.constant 0 : i32
    %c0_i32_0 = arith.constant 0 : i32
    return %arg0, %c0_i32 : i32, i32
  }
}

</mosaic_0001>

<bundles_post_ra>
// kernel: tpu_custom_call.1
= control target key start
LH: loop header
LB: loop body
LE: loop exit
PB: predicated region body
PF: predicated region fallthrough
CT: control target
= control target key end

     0   :  { %6 = vsyncpa [#allocation3], 0  ;;  %s132_s0 = inlined_call_operand.hbm [shape: f32[2,1024], index: 0, kind: input, shape index: {}]   ;;  %s133_s1 = inlined_call_operand.hbm [shape: f32[2,1024], index: 1, kind: output, shape index: {}]  }
   0x1   :  { %7 = vsyncpa [#allocation4], 0  ;;  %s96_s6 = smov [#allocation2]   ;;  %s48_s10 = scalar_lea.hbm %s132_s0, 256 }
   0x2   :  { %s14_s7 = sshll.u32 %s96_s6, 4  ;;  %p49_p0 = scmp.ne.s32.totalorder %s132_s0, %s48_s10  ;;  %s15_s7 = int_to_ptr.vmem [resolvable:$true] %s14_s7 }
   0x3   :  { %p52_p1 = scmp.lt.u32.totalorder %s48_s10, %s132_s0 }
   0x5   :  { %p54_p2 = pnand %p52_p1, %p49_p0 }
   0x7   :  { %57 = shalt.err (!%p54_p2)
}
   0x8   :  { %s58_s15 = scalar_lea.vmem %s15_s7, 256  ;;  %p63_p4 = scmp.lt.s32.totalorder %s15_s7, %s15_s7 }
   0x9   :  { %p59_p3 = scmp.ne.s32.totalorder %s15_s7, %s58_s15  ;;  %p64_p5 = scmp.lt.s32.totalorder %s58_s15, %s58_s15 }
   0xb   :  { %p65_p6 = por %p64_p5, %p63_p4 }
   0xd   :  { %p66_p7 = pnand %p65_p6, %p59_p3 }
   0xf   :  { %69 = shalt.err (!%p66_p7)
}
  0x10   :  { %17 = dma.hbm_to_vmem [thread:$0]  %s132_s0, 256, %s15_s7, [#allocation3]  }
  0x11   :  { %92 = dma.done.wait [#allocation3], 256  }
  0x12   :  { %93 = vsyncadd [#allocation3], 4294967040  ;;  %v21_v0 = vld [vmem:[#allocation2] sm:$0xff]  ;;  %v22_v1 = vld [vmem:[#allocation2 + $0x8] sm:$0xff]  ;;  %s97_s18 = smov [#allocation5]  }
  0x13   :  { %s35_s19 = sshll.u32 %s97_s18, 4  ;;  %v23_v2 = vmul.f32 1.5, %v21_v0  ;;  %v24_v3 = vmul.f32 1.5, %v22_v1  ;;  %s36_s19 = int_to_ptr.vmem [resolvable:$true] %s35_s19 }
  0x14   :  { %s70_s20 = scalar_lea.vmem %s36_s19, 256  ;;  %p75_p9 = scmp.lt.s32.totalorder %s36_s19, %s36_s19 }
  0x15   :  { %v44_v4 = vadd.f32 -0.25, %v23_v2  ;;  %v45_v5 = vadd.f32 -0.25, %v24_v3  ;;  %p71_p8 = scmp.ne.s32.totalorder %s36_s19, %s70_s20  ;;  %p76_p10 = scmp.lt.s32.totalorder %s70_s20, %s70_s20 }
  0x17   :  { %27 = vst [vmem:[#allocation5] sm:$0xff] %v44_v4  ;;  %28 = vst [vmem:[#allocation5 + $0x8] sm:$0xff] %v45_v5  ;;  %p77_p11 = por %p76_p10, %p75_p9 }
  0x19   :  { %p78_p12 = pnand %p77_p11, %p71_p8 }
  0x1b   :  { %81 = shalt.err (!%p78_p12)
}
  0x1c   :  { %s82_s22 = scalar_lea.hbm %s133_s1, 256 }
  0x1d   :  { %p83_p13 = scmp.ne.s32.totalorder %s133_s1, %s82_s22  ;;  %p86_p0 = scmp.lt.u32.totalorder %s82_s22, %s133_s1 }
  0x1f   :  { %p88_p1 = pnand %p86_p0, %p83_p13 }
  0x21   :  { %91 = shalt.err (!%p88_p1)
}
  0x22   :  { %38 = dma.vmem_to_hbm [thread:$0]  %s36_s19, 256, %s133_s1, [#allocation4]  }
  0x23   :  { %94 = dma.done.wait [#allocation4], 256  }
  0x24   :  { %95 = vsyncadd [#allocation4], 4294967040 }
  0x25   :  { %42 = vsyncpa [#allocation3], 1 }
  0x26   :  { %43 = vsyncpa [#allocation4], 1 }

</bundles_post_ra>
